<compile_context>
chip_gen: v6e
topology: v6e:2x2x1
jax: 0.10.0
libtpu: 0.0.40
codegen_flags: <defaults>
</compile_context>

<pallas_src>
import functools

import jax
import jax.numpy as jnp
from jax.experimental import pallas as pl
from jax.experimental.pallas import tpu as pltpu

LANE = 128  # TPU vreg lane width


# ---------------------------------------------------------------------------
# Kernel
# ---------------------------------------------------------------------------
def _rst_compute(x_ref, w_ref, b_ref, fcw_ref, fc_b, o_ref, hp):
    """Fused single-step LSTM (i/g/o gates only) + Linear(H, 1).

    x_ref  : (bb, D)      input rows
    w_ref  : (D, 3*hp)    [Wi | Wg | Wo]^T, each gate zero-padded to hp lanes
    b_ref  : (1, 3*hp)    matching (b_ih + b_hh), zero-padded
    fcw_ref: (1, hp)      fc weight row, zero-padded
    fc_b   : scalar or (1, 1) value of the fc bias
    o_ref  : (bb, LANE)   lane-dense output slab (result replicated over lanes)
    """
    # gates = x @ W^T + (b_ih + b_hh); the h0 @ W_hh^T term is zero (h0 == 0).
    gates = (
        jnp.dot(x_ref[...], w_ref[...], preferred_element_type=jnp.float32)
        + b_ref[...]
    )
    # hp is a multiple of 128 -> all slices are full, 128-lane-aligned tiles.
    i_g = jax.nn.sigmoid(gates[:, 0 * hp:1 * hp])
    g_g = jnp.tanh(gates[:, 1 * hp:2 * hp])
    o_g = jax.nn.sigmoid(gates[:, 2 * hp:3 * hp])
    # c1 = f*c0 + i*g = i*g (c0 == 0);  hn[-1] = o * tanh(c1).
    h = o_g * jnp.tanh(i_g * g_g)                      # (bb, hp); pad lanes -> 0
    # Linear(H, 1) on VPU (mul) + XLU (lane reduce); pad lanes of fcw are zero.
    out = jnp.sum(h * fcw_ref[...], axis=-1, keepdims=True) + fc_b   # (bb, 1)
    # Lane-dense store; wrapper takes column 0.
    o_ref[...] = jnp.broadcast_to(out, o_ref.shape).astype(o_ref.dtype)


def _rst_kernel_smem_bias(x_ref, w_ref, b_ref, fcw_ref, fcb_ref, o_ref, *, hp):
    # fcb_ref: (1, 1) scalar living in SMEM (grid-less path).
    _rst_compute(x_ref, w_ref, b_ref, fcw_ref, fcb_ref[0, 0], o_ref, hp)


def _rst_kernel_vmem_bias(x_ref, w_ref, b_ref, fcw_ref, fcb_ref, o_ref, *, hp):
    # fcb_ref: (1, 1) VMEM tile (B-tiled pipelined path).
    _rst_compute(x_ref, w_ref, b_ref, fcw_ref, fcb_ref[...], o_ref, hp)


# ---------------------------------------------------------------------------
# Host-side parameter repacking (PyTorch layout -> kernel layout)
# ---------------------------------------------------------------------------
def pack_rst_params(w_ih, b_ih, b_hh, fc_weight, fc_bias, *, hidden_size):
    """w_ih: (4H, D) with PyTorch gate order [i|f|g|o]; b_*: (4H,);
    fc_weight: (1, H); fc_bias: (1,).

    Drops the dead forget gate and zero-pads each remaining gate (and the fc
    row) to hp = round_up(H, 128) lanes. Padded gate lanes get weight/bias 0
    -> i_pad=0.5, g_pad=0 -> h_pad=0, and fc pad lanes are 0 anyway.
    """
    H = hidden_size
    hp = ((H + LANE - 1) // LANE) * LANE
    b = b_ih + b_hh

    def gate(k):
        w = jnp.pad(w_ih[k * H:(k + 1) * H, :].T, ((0, 0), (0, hp - H)))  # (D, hp)
        bv = jnp.pad(b[k * H:(k + 1) * H], (0, hp - H))                   # (hp,)
        return w, bv

    (w_i, b_i), (w_g, b_g), (w_o, b_o) = gate(0), gate(2), gate(3)  # skip f (dead)
    w3 = jnp.concatenate([w_i, w_g, w_o], axis=1)                   # (D, 3*hp)
    b3 = jnp.concatenate([b_i, b_g, b_o])[None, :]                  # (1, 3*hp)
    fcw = jnp.pad(fc_weight[0], (0, hp - H))[None, :]               # (1, hp)
    fcb = fc_bias.reshape(1, 1)                                     # (1, 1)
    return w3, b3, fcw, fcb, hp


# ---------------------------------------------------------------------------
# Forward wrapper
# ---------------------------------------------------------------------------
def rst_forward(x, w3, b3, fcw, fcb, *, hidden_pad, block_b=256):
    """RST forward: x (B, D) float32 -> (B,) float32.

    NOTE: valid only for the module as written (seq_len == 1, h0 = c0 = 0);
    that assumption is what makes dropping W_hh and the forget gate legal.
    """
    B, D = x.shape
    hp = hidden_pad

    if B <= block_b:
        # Single block: grid-less call -> no pipeline prologue/epilogue and no
        # double-buffering of operands that are read exactly once.
        kernel = functools.partial(_rst_kernel_smem_bias, hp=hp)
        out = pl.pallas_call(
            kernel,
            out_shape=jax.ShapeDtypeStruct((B, LANE), jnp.float32),
            in_specs=[
                pl.BlockSpec(memory_space=pltpu.MemorySpace.VMEM),   # x   (B, D)
                pl.BlockSpec(memory_space=pltpu.MemorySpace.VMEM),   # w3  (D, 3hp)
                pl.BlockSpec(memory_space=pltpu.MemorySpace.VMEM),   # b3  (1, 3hp)
                pl.BlockSpec(memory_space=pltpu.MemorySpace.VMEM),   # fcw (1, hp)
                pl.BlockSpec(memory_space=pltpu.MemorySpace.SMEM),   # fcb (1, 1) scalar
            ],
            out_specs=pl.BlockSpec(memory_space=pltpu.MemorySpace.VMEM),
        )(x, w3, b3, fcw, fcb)
        return out[:, 0]

    # Production path: tile the batch (block_b=256 matches the v6e/v7x MXU
    # height; use 128 on v5e), keep the weights resident (constant index_map),
    # and mark the B axis "parallel" so v7x can shard it across its 2 TCs.
    # VMEM: 2*block_b*D + D*3hp + 2*block_b*LANE floats -- tiny here; re-budget
    # against v7x's 64 MiB (vmem_limit_bytes) if D/H grow.
    kernel = functools.partial(_rst_kernel_vmem_bias, hp=hp)
    out = pl.pallas_call(
        kernel,
        out_shape=jax.ShapeDtypeStruct((B, LANE), jnp.float32),
        grid_spec=pltpu.PrefetchScalarGridSpec(
            num_scalar_prefetch=0,
            grid=(pl.cdiv(B, block_b),),
            in_specs=[
                pl.BlockSpec((block_b, D), lambda i: (i, 0)),   # x tile
                pl.BlockSpec((D, 3 * hp), lambda i: (0, 0)),    # weights: resident
                pl.BlockSpec((1, 3 * hp), lambda i: (0, 0)),
                pl.BlockSpec((1, hp), lambda i: (0, 0)),
                pl.BlockSpec((1, 1), lambda i: (0, 0)),         # fc bias
            ],
            out_specs=pl.BlockSpec((block_b, LANE), lambda i: (i, 0)),
        ),
        compiler_params=pltpu.CompilerParams(
            dimension_semantics=("parallel",),
        ),
    )(x, w3, b3, fcw, fcb)
    return out[:, 0]


# ---------------------------------------------------------------------------
# Pure-JAX reference (directly from PyTorch-layout parameters)
# ---------------------------------------------------------------------------
def rst_reference(x, w_ih, b_ih, b_hh, fc_weight, fc_bias, *, hidden_size):
    H = hidden_size
    gates = x @ w_ih.T + (b_ih + b_hh)
    i = jax.nn.sigmoid(gates[:, 0 * H:1 * H])
    f = jax.nn.sigmoid(gates[:, 1 * H:2 * H])
    g = jnp.tanh(gates[:, 2 * H:3 * H])
    o = jax.nn.sigmoid(gates[:, 3 * H:4 * H])
    c = f * 0.0 + i * g          # c0 == 0
    h = o * jnp.tanh(c)          # hn[-1]
    return (h @ fc_weight.T + fc_bias)[:, 0]


if __name__ == "__main__":
    batch = 8
    input_size = 32
    hidden_size = 64

    key = jax.random.PRNGKey(0)
    kx, k1, k2, k3, k4, k5, kx2 = jax.random.split(key, 7)

    # Deterministic synthetic parameters matching nn.LSTM / nn.Linear shapes.
    scale = 1.0 / jnp.sqrt(hidden_size)
    w_ih = jax.random.uniform(k1, (4 * hidden_size, input_size), jnp.float32,
                              -scale, scale)                       # weight_ih_l0
    b_ih = jax.random.uniform(k2, (4 * hidden_size,), jnp.float32, -scale, scale)
    b_hh = jax.random.uniform(k3, (4 * hidden_size,), jnp.float32, -scale, scale)
    fc_weight = jax.random.uniform(k4, (1, hidden_size), jnp.float32,
                                   -scale, scale)                  # Linear(H, 1)
    fc_bias = jax.random.uniform(k5, (1,), jnp.float32, -scale, scale)

    w3, b3, fcw, fcb, hp = pack_rst_params(
        w_ih, b_ih, b_hh, fc_weight, fc_bias, hidden_size=hidden_size)

    # --- small batch: grid-less single-block path ---
    x = jax.random.normal(kx, (batch, input_size), jnp.float32)
    out = rst_forward(x, w3, b3, fcw, fcb, hidden_pad=hp)
    out = jax.block_until_ready(out)
    ref = rst_reference(x, w_ih, b_ih, b_hh, fc_weight, fc_bias,
                        hidden_size=hidden_size)
    assert out.shape == (batch,)
    assert jnp.allclose(out, ref, atol=2e-5, rtol=2e-5)

    # --- larger batch: B-tiled "production" path (grid=(2,), block_b=256) ---
    big_batch = 512
    x_big = jax.random.normal(kx2, (big_batch, input_size), jnp.float32)
    out_big = rst_forward(x_big, w3, b3, fcw, fcb, hidden_pad=hp, block_b=256)
    out_big = jax.block_until_ready(out_big)
    ref_big = rst_reference(x_big, w_ih, b_ih, b_hh, fc_weight, fc_bias,
                            hidden_size=hidden_size)
    assert out_big.shape == (big_batch,)
    assert jnp.allclose(out_big, ref_big, atol=2e-5, rtol=2e-5)

    print("KERNEL_OK")
</pallas_src>

<mosaic_0001>
module attributes {stable_mosaic.version = 11 : i64} {
  func.func @_rst_kernel_smem_bias(%arg0: memref<8x32xf32, #tpu.memory_space<vmem>>, %arg1: memref<32x384xf32, #tpu.memory_space<vmem>>, %arg2: memref<1x384xf32, #tpu.memory_space<vmem>>, %arg3: memref<1x128xf32, #tpu.memory_space<vmem>>, %arg4: memref<1x1xf32, #tpu.memory_space<smem>>, %arg5: memref<8x128xf32, #tpu.memory_space<vmem>>) attributes {dimension_semantics = [], scalar_prefetch = 0 : i64, scratch_operands = 0 : i64, tpu.core_type = #tpu.core_type<tc>} {
    %c0 = arith.constant 0 : index
    %c0_0 = arith.constant 0 : index
    %0 = memref.load %arg4[%c0, %c0_0] : memref<1x1xf32, #tpu.memory_space<smem>>
    %c0_1 = arith.constant 0 : index
    %c0_2 = arith.constant 0 : index
    %1 = vector.load %arg0[%c0_1, %c0_2] : memref<8x32xf32, #tpu.memory_space<vmem>>, vector<8x32xf32>
    %c0_3 = arith.constant 0 : index
    %c0_4 = arith.constant 0 : index
    %2 = vector.load %arg1[%c0_3, %c0_4] : memref<32x384xf32, #tpu.memory_space<vmem>>, vector<32x384xf32>
    %cst = arith.constant dense<0.000000e+00> : vector<8x384xf32>
    %3 = tpu.matmul %1, %2, %cst {dimension_numbers = #tpu.dot_dimension_numbers<[1], [0], [0], [1], [0, 0, 1, 1], [], []>} : vector<8x32xf32>, vector<32x384xf32>, vector<8x384xf32> -> vector<8x384xf32>
    %c0_5 = arith.constant 0 : index
    %c0_6 = arith.constant 0 : index
    %4 = vector.load %arg2[%c0_5, %c0_6] : memref<1x384xf32, #tpu.memory_space<vmem>>, vector<1x384xf32>
    %5 = vector.broadcast %4 : vector<1x384xf32> to vector<8x384xf32>
    %6 = arith.addf %3, %5 : vector<8x384xf32>
    %7 = vector.extract_strided_slice %6 {offsets = [0, 0], sizes = [8, 128], strides = [1, 1]} : vector<8x384xf32> to vector<8x128xf32>
    %8 = arith.negf %7 : vector<8x128xf32>
    %9 = math.exp %8 : vector<8x128xf32>
    %cst_7 = arith.constant 1.000000e+00 : f32
    %10 = vector.broadcast %cst_7 : f32 to vector<8x128xf32>
    %11 = arith.addf %10, %9 : vector<8x128xf32>
    %12 = arith.divf %10, %11 : vector<8x128xf32>
    %13 = vector.extract_strided_slice %6 {offsets = [0, 128], sizes = [8, 128], strides = [1, 1]} : vector<8x384xf32> to vector<8x128xf32>
    %14 = math.tanh %13 : vector<8x128xf32>
    %15 = vector.extract_strided_slice %6 {offsets = [0, 256], sizes = [8, 128], strides = [1, 1]} : vector<8x384xf32> to vector<8x128xf32>
    %16 = arith.negf %15 : vector<8x128xf32>
    %17 = math.exp %16 : vector<8x128xf32>
    %cst_8 = arith.constant 1.000000e+00 : f32
    %18 = vector.broadcast %cst_8 : f32 to vector<8x128xf32>
    %19 = arith.addf %18, %17 : vector<8x128xf32>
    %20 = arith.divf %18, %19 : vector<8x128xf32>
    %21 = arith.mulf %12, %14 : vector<8x128xf32>
    %22 = math.tanh %21 : vector<8x128xf32>
    %23 = arith.mulf %20, %22 : vector<8x128xf32>
    %c0_9 = arith.constant 0 : index
    %c0_10 = arith.constant 0 : index
    %24 = vector.load %arg3[%c0_9, %c0_10] : memref<1x128xf32, #tpu.memory_space<vmem>>, vector<1x128xf32>
    %25 = vector.broadcast %24 : vector<1x128xf32> to vector<8x128xf32>
    %26 = arith.mulf %23, %25 : vector<8x128xf32>
    %cst_11 = arith.constant dense<0.000000e+00> : vector<8xf32>
    %27 = vector.multi_reduction <add>, %26, %cst_11 [1] : vector<8x128xf32> to vector<8xf32>
    %28 = vector.shape_cast %27 : vector<8xf32> to vector<8x1xf32>
    %29 = vector.broadcast %0 : f32 to vector<8x1xf32>
    %30 = arith.addf %28, %29 : vector<8x1xf32>
    %31 = vector.shape_cast %30 : vector<8x1xf32> to vector<8x1xf32>
    %32 = vector.broadcast %31 : vector<8x1xf32> to vector<8x128xf32>
    %c0_12 = arith.constant 0 : index
    %c0_13 = arith.constant 0 : index
    %33 = vector.load %arg5[%c0_12, %c0_13] : memref<8x128xf32, #tpu.memory_space<vmem>>, vector<8x128xf32>
    tpu.vector_store %arg5[%c0_12, %c0_13], %32 {strides = array<i32>} : memref<8x128xf32, #tpu.memory_space<vmem>>, vector<8x128xf32>,
    return
  }
}

</mosaic_0001>

<bundles_post_ra>
// kernel: tpu_custom_call.1
= control target key start
LH: loop header
LB: loop body
LE: loop exit
PB: predicated region body
PF: predicated region fallthrough
CT: control target
= control target key end

     0   :  { %11 = vsyncpa [#allocation4], 0  ;;  %s430_s0 = inlined_call_operand.hbm [shape: f32[8,32], index: 0, kind: input, shape index: {}]   ;;  %s431_s1 = inlined_call_operand.hbm [shape: f32[32,384], index: 1, kind: input, shape index: {}]   ;;  %s432_s2 = inlined_call_operand.vmem [shape: f32[1,384], index: 2, kind: input, shape index: {}]   ;;  %s433_s3 = inlined_call_operand.vmem [shape: f32[1,128], index: 3, kind: input, shape index: {}]   ;;  %s434_s4 = inlined_call_operand.<no memory space> [shape: f32[1,1], index: 4, kind: input, shape index: {}]   ;;  %s435_s5 = inlined_call_operand.hbm [shape: f32[8,128], index: 5, kind: output, shape index: {}]  }
   0x1   :  { %12 = vsyncpa [#allocation7], 0 }
   0x2   :  { %13 = vsyncpa [#allocation5], 0  ;;  %s375_s18 = smov [#allocation3]   ;;  %s376_s20 = smov [#allocation6]  }
   0x3   :  { %s20_s19 = sshll.u32 %s375_s18, 4  ;;  %s29_s21 = sshll.u32 %s376_s20, 4  ;;  %s21_s19 = int_to_ptr.vmem [resolvable:$true] %s20_s19  ;;  %s30_s21 = int_to_ptr.vmem [resolvable:$true] %s29_s21 }
   0x4   :  { %s317_s22 = scalar_lea.vmem %s21_s19, 128  ;;  %p322_p1 = scmp.lt.s32.totalorder %s21_s19, %s21_s19 }
   0x5   :  { %p318_p0 = scmp.ne.s32.totalorder %s21_s19, %s317_s22  ;;  %p323_p2 = scmp.lt.s32.totalorder %s317_s22, %s317_s22 }
   0x7   :  { %p324_p3 = por %p323_p2, %p322_p1 }
   0x9   :  { %p325_p4 = pnand %p324_p3, %p318_p0 }
   0xb   :  { %328 = shalt.err (!%p325_p4)
}
   0xc   :  { %23 = dma.hbm_to_vmem [thread:$0]  %s430_s0, 128, %s21_s19, [#allocation4]  }
   0xd   :  { %s337_s25 = scalar_lea.vmem %s30_s21, 1536  ;;  %p342_p6 = scmp.lt.s32.totalorder %s30_s21, %s30_s21 }
   0xe   :  { %p338_p5 = scmp.ne.s32.totalorder %s30_s21, %s337_s25  ;;  %p343_p7 = scmp.lt.s32.totalorder %s337_s25, %s337_s25 }
  0x10   :  { %p344_p8 = por %p343_p7, %p342_p6 }
  0x12   :  { %p345_p9 = pnand %p344_p8, %p338_p5 }
  0x14   :  { %348 = shalt.err (!%p345_p9)
}
  0x15   :  { %s377_s26 = smov 384   ;;  %s378_s27 = smov 24  }
  0x16   :  { %35 = dma.hbm_to_vmem [thread:$0]  %s431_s1, 1536, %s30_s21, [#allocation7], %s377_s26, %s377_s26, %s378_s27  }
  0x17   :  { %369 = dma.done.wait [#allocation4], 128  }
  0x18   :  { %370 = vsyncadd [#allocation4], 4294967168 }
  0x19   :  { %371 = dma.done.wait [#allocation7], 1536  }
  0x1a   :  { %372 = vsyncadd [#allocation7], 4294965760  ;;  %v379_v0 = vmov 0.0   ;;  %vm380_vm0 = vmmov 0   ;;  %v60_v1 = vld [vmem:[#allocation6 + $0x50] sm:$0xff]  ;;  %v59_v2 = vld [vmem:[#allocation6 + $0x48] sm:$0xff]  ;;  %v64_v14 = vlaneseq  ;;  %v250_v44 = vstv %s434_s4 }
  0x1b   :  { %147 = vmatprep.mubr.f32.mxu0 %v379_v0  ;;  %279 = vmatprep.subr.mxu1 %v379_v0  ;;  %v57_v3 = vld [vmem:[#allocation6 + $0x38] sm:$0xff]  ;;  %v56_v4 = vld [vmem:[#allocation6 + $0x30] sm:$0xff]  ;;  %v54_v5 = vld [vmem:[#allocation6 + $0x20] sm:$0xff]  ;;  %vm79_vm1 = vcmask 261120   ;;  %s381_s8 = smov [#allocation8]  }
  0x1c   :  { %287 = vmatprep.mubr.msk.f32.mxu1 %vm380_vm0, %v379_v0  ;;  %107 = vmatprep.subr.mxu0 %v60_v1  ;;  %v53_v6 = vld [vmem:[#allocation6 + $0x18] sm:$0xff]  ;;  %v58_v8 = vld [vmem:[#allocation6 + $0x40] sm:$0xff]  ;;  %v51_v9 = vld [vmem:[#allocation6 + $0x8] sm:$0xff]  ;;  %v65_v15 = vshrl.u32 %v64_v14, 7  ;;  %s259_s9 = sshll.u32 %s381_s8, 4  ;;  %s260_s9 = int_to_ptr.vmem [resolvable:$true] %s259_s9 }
  0x1d   :  { %108 = vmatpush1.msra.mxu0 %v59_v2  ;;  %v61_v7 = vld [vmem:[#allocation6 + $0x58] sm:$0xff]  ;;  %v50_v10 = vld [vmem:[#allocation6] sm:$0xff]  ;;  %v55_v11 = vld [vmem:[#allocation6 + $0x28] sm:$0xff]  ;;  %s349_s10 = scalar_lea.vmem %s260_s9, 128  ;;  %p354_p11 = scmp.lt.s32.totalorder %s260_s9, %s260_s9 }
  0x1e   :  { %109 = vmatprep.subr.mxu0 %v57_v3  ;;  %280 = vmatpush3.msra.mxu1 %v61_v7  ;;  %v49_v12 = vld [vmem:[#allocation3] sm:$0xff]  ;;  %v52_v13 = vld [vmem:[#allocation6 + $0x10] sm:$0xff]  ;;  %v66_v16 = vsub.s32 0, %v65_v15  ;;  %v74_v19 = vsub.s32 2, %v65_v15  ;;  %v70_v27 = vsub.s32 1, %v65_v15  ;;  %p350_p10 = scmp.ne.s32.totalorder %s260_s9, %s349_s10  ;;  %p355_p12 = scmp.lt.s32.totalorder %s349_s10, %s349_s10 }
  0x1f   :  { %110 = vmatpush1.msra.mxu0 %v56_v4  ;;  %281 = vmatprep.subr.mxu1 %v379_v0  ;;  %v62_v17 = vld [vmem:[%s432_s2] sm:$0x7] }
  0x20   :  { %111 = vmatprep.subr.mxu0 %v54_v5  ;;  %282 = vmatpush3.msra.mxu1 %v58_v8  ;;  %v67_v18 = vrot.slane %v62_v17, %v66_v16  ;;  %v75_v24 = vrot.slane %v62_v17, %v74_v19  ;;  %v71_v29 = vrot.slane %v62_v17, %v70_v27  ;;  %v273_v41 = vld [vmem:[%s433_s3] ss:$0 sm:$0xff]  ;;  %p356_p13 = por %p355_p12, %p354_p11 }
  0x21   :  { %112 = vmatpush1.msra.mxu0 %v53_v6  ;;  %283 = vmatprep.subr.mxu1 %v379_v0 }
  0x22   :  { %113 = vmatprep.subr.mxu0 %v51_v9  ;;  %284 = vmatpush3.msra.mxu1 %v55_v11  ;;  %p357_p0 = pnand %p356_p13, %p350_p10 }
  0x23   :  { %114 = vmatpush1.msra.mxu0 %v50_v10  ;;  %285 = vmatprep.subr.mxu1 %v379_v0 }
  0x24   :  { %269 = vmatmul.mubr.msk.f32.vlgmr.msra.gmra.mxu0 %vm79_vm1, %v49_v12  ;;  %286 = vmatpush3.msra.mxu1 %v52_v13 }
  0x25   :  { %288 = vmatmul.mubr.msk.f32.vlgmr.msra.gmra.mxu1 %vm79_vm1, %v49_v12 }
  0xe4   :  { %v149_v20 = vpop.f32.mrf.mxu0 }
  0xe5   :  { %v150_v21 = vadd.f32 %v149_v20, %v67_v18  ;;  %v220_v22 = vpop.f32.mrf.mxu1 }
  0xe6   :  { %v221_v26 = vadd.f32 %v220_v22, %v75_v24  ;;  %v151_v30 = vpop.f32.mrf.mxu0 }
  0xe7   :  { %v271_v23 = vmul.f32 -1.442695, %v150_v21  ;;  %v289_v25 = vpop.f32.mrf.mxu1  ;;  %v152_v31 = vadd.f32 %v151_v30, %v71_v29 }
  0xe8   :  { %v272_v28 = vmul.f32 -1.442695, %v221_v26 }
  0xe9   :  { %297 = vpow2.f32 %v271_v23 }
  0xea   :  { %299 = vpow2.f32 %v272_v28 }
  0xeb   :  { %301 = vtanh.f32 %v152_v31 }
  0xf6   :  { %v298_v32 = vpop.eup %297 }
  0xf7   :  { %v227_v33 = vadd.f32 1.0, %v298_v32  ;;  %v300_v34 = vpop.eup %299 }
  0xf8   :  { %v234_v35 = vadd.f32 1.0, %v300_v34  ;;  %v302_v36 = vpop.eup %301 }
  0xf9   :  { %303 = vrcp.f32 %v227_v33 }
  0xfa   :  { %305 = vrcp.f32 %v234_v35 }
 0x106   :  { %v304_v37 = vpop.eup %303 }
 0x107   :  { %v237_v38 = vmul.f32 %v304_v37, %v302_v36  ;;  %v306_v39 = vpop.eup %305 }
 0x109   :  { %307 = vtanh.f32 %v237_v38 }
 0x116   :  { %v308_v40 = vpop.eup %307 }
 0x117   :  { %v239_v42 = vmul.f32 %v308_v40, %v306_v39 }
 0x119   :  { %v247_v43 = vmul.f32 %v273_v41, %v239_v42 }
 0x11b   :  { %248 = vadd.xlane.f32.xlu0 %v247_v43 }
 0x1a4   :  { %v249_v45 = vpop.xlane.xlu0 %248 }
 0x1a5   :  { %v251_v46 = vadd.f32 %v250_v44, %v249_v45 }
 0x1a7   :  { %252 = vst [vmem:[#allocation8] sm:$0xff] %v251_v46 }
 0x1a8   :  { %360 = shalt.err (!%p357_p0)
}
 0x1a9   :  { %262 = dma.vmem_to_hbm [thread:$0]  %s260_s9, 128, %s435_s5, [#allocation5]  }
 0x1aa   :  { %373 = dma.done.wait [#allocation5], 128  }
 0x1ab   :  { %374 = vsyncadd [#allocation5], 4294967168 }
 0x1ac   :  { %266 = vsyncpa [#allocation4], 1 }
 0x1ad   :  { %267 = vsyncpa [#allocation7], 1 }
 0x1ae   :  { %268 = vsyncpa [#allocation5], 1 }

</bundles_post_ra>
